<compile_context>
chip_gen: v7x
topology: tpu7x:2x2x1
jax: 0.10.0
libtpu: 0.0.40
codegen_flags: <defaults>
</compile_context>

<pallas_src>
import jax
import jax.numpy as jnp
from jax.experimental import pallas as pl
from jax.experimental.pallas import tpu as pltpu

LANE = 128          # hidden (lane) dims are padded to a multiple of this
SUBLANE = 8         # batch tile granularity
VMEM_BUDGET = 24 * 1024 * 1024  # conservative working-set budget (fits v7x 64 MiB)


def _critic_kernel(x_ref, w1_ref, b1_ref, w2_ref, b2_ref, w3_ref, b3_ref, out_ref):
    # One batch tile per grid step; weights are whole-array VMEM-resident blocks.
    x = x_ref[...]                                                   # (TILE_B, d_in)
    h = jnp.dot(x, w1_ref[...], preferred_element_type=jnp.float32) + b1_ref[...]
    h = jnp.maximum(h, 0.0)                                          # ReLU
    h = jnp.dot(h, w2_ref[...], preferred_element_type=jnp.float32) + b2_ref[...]
    h = jnp.maximum(h, 0.0)                                          # ReLU
    v = jnp.dot(h, w3_ref[...], preferred_element_type=jnp.float32) + b3_ref[...]
    out_ref[...] = v.astype(out_ref.dtype)                           # Identity head


def _round_up(x, m):
    return (x + m - 1) // m * m


def prepare_params(params):
    """Pad weights/biases once (hidden dims -> multiple of 128). Zero padding is
    exact: ReLU(0)=0 and zero weight rows/cols contribute nothing."""
    W1, b1 = params["W1"], params["b1"]   # (d_in, h1), (h1,)
    W2, b2 = params["W2"], params["b2"]   # (h1, h2),  (h2,)
    W3, b3 = params["W3"], params["b3"]   # (h2, 1),   (1,)
    h1 = W1.shape[1]
    h2 = W2.shape[1]
    h1p = _round_up(h1, LANE)
    h2p = _round_up(h2, LANE)

    W1_p = jnp.pad(W1, ((0, 0), (0, h1p - h1)))            # (d_in, h1p)
    b1_p = jnp.pad(b1, (0, h1p - h1)).reshape(1, h1p)      # (1, h1p)
    W2_p = jnp.pad(W2, ((0, h1p - h1), (0, h2p - h2)))     # (h1p, h2p)
    b2_p = jnp.pad(b2, (0, h2p - h2)).reshape(1, h2p)      # (1, h2p)
    W3_p = jnp.pad(W3, ((0, h2p - h2), (0, 0)))            # (h2p, 1)  -- keep 1 output col
    b3_p = b3.reshape(1, 1)                                # (1, 1)
    return (W1_p, b1_p, W2_p, b2_p, W3_p, b3_p)


def _pick_tile_b(B, d_in, h1p, h2p):
    """Largest batch tile (multiple of 8, <=1024) whose working set fits the budget."""
    weights_bytes = 4 * (d_in * h1p + h1p + h1p * h2p + h2p + h2p + 1)
    tile_b = min(1024, _round_up(B, SUBLANE))
    while tile_b > SUBLANE:
        # double-buffered x/out tiles + f32 activations for both hidden layers
        per_tile = 4 * tile_b * (2 * d_in + 2 * 1 + h1p + h2p)
        if weights_bytes + per_tile <= VMEM_BUDGET:
            break
        tile_b -= SUBLANE
    return tile_b


def critic_forward(s, prep, tile_b=None):
    """s: (B, d_in) float32. prep: output of prepare_params."""
    W1_p, b1_p, W2_p, b2_p, W3_p, b3_p = prep
    B, d_in = s.shape
    h1p = W1_p.shape[1]
    h2p = W2_p.shape[1]

    if tile_b is None:
        tile_b = _pick_tile_b(B, d_in, h1p, h2p)
    num_tiles = pl.cdiv(B, tile_b)

    def resident(a):
        # Whole-array block, same block index every grid step -> stays in VMEM.
        return pl.BlockSpec(a.shape, lambda i: (0,) * a.ndim)

    grid_spec = pltpu.PrefetchScalarGridSpec(
        num_scalar_prefetch=0,
        grid=(num_tiles,),
        in_specs=[
            pl.BlockSpec((tile_b, d_in), lambda i: (i, 0)),   # x: tiled over batch
            resident(W1_p), resident(b1_p),
            resident(W2_p), resident(b2_p),
            resident(W3_p), resident(b3_p),
        ],
        out_specs=pl.BlockSpec((tile_b, 1), lambda i: (i, 0)),
    )

    # Parallel batch axis for megacore / v7x dual-TC; keep "arbitrary" for a
    # single grid point (no point sharding a length-1 axis).
    semantics = ("parallel",) if num_tiles > 1 else ("arbitrary",)

    flops = 2 * B * (d_in * h1p + h1p * h2p + h2p * 1)
    bytes_accessed = 4 * (
        B * d_in + B * 1
        + d_in * h1p + h1p + h1p * h2p + h2p + h2p + 1
    )

    return pl.pallas_call(
        _critic_kernel,
        out_shape=jax.ShapeDtypeStruct((B, 1), jnp.float32),
        grid_spec=grid_spec,
        compiler_params=pltpu.CompilerParams(dimension_semantics=semantics),
        cost_estimate=pl.CostEstimate(
            flops=flops, transcendentals=0, bytes_accessed=bytes_accessed),
    )(s, W1_p, b1_p, W2_p, b2_p, W3_p, b3_p)


def init_critic_params(key, input_size, hidden_sizes):
    """PyTorch-Linear-style init: U(-1/sqrt(fan_in), 1/sqrt(fan_in)).
    Weights stored as (in_features, out_features) so y = x @ W + b."""
    sizes = [input_size] + list(hidden_sizes) + [1]
    params = {}
    for i in range(len(sizes) - 1):
        fan_in, fan_out = sizes[i], sizes[i + 1]
        key, kw, kb = jax.random.split(key, 3)
        bound = 1.0 / jnp.sqrt(fan_in)
        params[f"W{i+1}"] = jax.random.uniform(
            kw, (fan_in, fan_out), jnp.float32, -bound, bound)
        params[f"b{i+1}"] = jax.random.uniform(
            kb, (fan_out,), jnp.float32, -bound, bound)
    return params


def critic_reference(s, params):
    """Pure-JAX reference for correctness checking."""
    h = jnp.maximum(s @ params["W1"] + params["b1"], 0.0)
    h = jnp.maximum(h @ params["W2"] + params["b2"], 0.0)
    return h @ params["W3"] + params["b3"]


if __name__ == "__main__":
    key = jax.random.PRNGKey(0)
    k_in, k_par = jax.random.split(key)

    batch = 8
    input_size = 16
    hidden_sizes = (32, 32)

    s = jax.random.normal(k_in, (batch, input_size), jnp.float32)
    params = init_critic_params(k_par, input_size, hidden_sizes)
    prep = prepare_params(params)   # pad weights once, reuse every call

    v = critic_forward(s, prep)
    v = jax.block_until_ready(v)

    v_ref = critic_reference(s, params)
    assert v.shape == (batch, 1), v.shape
    assert jnp.allclose(v, v_ref, atol=1e-5, rtol=1e-5), (v, v_ref)

    print("KERNEL_OK")
</pallas_src>

<mosaic_0001>
module attributes {stable_mosaic.version = 11 : i64} {
  func.func @_critic_kernel(%arg0: i32, %arg1: memref<8x16xf32, #tpu.memory_space<vmem>>, %arg2: memref<16x128xf32, #tpu.memory_space<vmem>>, %arg3: memref<1x128xf32, #tpu.memory_space<vmem>>, %arg4: memref<128x128xf32, #tpu.memory_space<vmem>>, %arg5: memref<1x128xf32, #tpu.memory_space<vmem>>, %arg6: memref<128x1xf32, #tpu.memory_space<vmem>>, %arg7: memref<1x1xf32, #tpu.memory_space<vmem>>, %arg8: memref<8x1xf32, #tpu.memory_space<vmem>>) attributes {dimension_semantics = [#tpu.dimension_semantics<arbitrary>], iteration_bounds = array<i64: 1>, scalar_prefetch = 0 : i64, scratch_operands = 0 : i64, tpu.core_type = #tpu.core_type<tc>, window_params = [{transform_indices = @transform_0, window_bounds = array<i64: 8, 16>}, {pipeline_mode = #tpu.pipeline_mode<synchronous>, transform_indices = @transform_1, window_bounds = array<i64: 16, 128>}, {pipeline_mode = #tpu.pipeline_mode<synchronous>, transform_indices = @transform_2, window_bounds = array<i64: 1, 128>}, {pipeline_mode = #tpu.pipeline_mode<synchronous>, transform_indices = @transform_3, window_bounds = array<i64: 128, 128>}, {pipeline_mode = #tpu.pipeline_mode<synchronous>, transform_indices = @transform_4, window_bounds = array<i64: 1, 128>}, {pipeline_mode = #tpu.pipeline_mode<synchronous>, transform_indices = @transform_5, window_bounds = array<i64: 128, 1>}, {pipeline_mode = #tpu.pipeline_mode<synchronous>, transform_indices = @transform_6, window_bounds = array<i64: 1, 1>}, {transform_indices = @transform_7, window_bounds = array<i64: 8, 1>}]} {
    %c0 = arith.constant 0 : index
    %c0_0 = arith.constant 0 : index
    %0 = vector.load %arg1[%c0, %c0_0] : memref<8x16xf32, #tpu.memory_space<vmem>>, vector<8x16xf32>
    %c0_1 = arith.constant 0 : index
    %c0_2 = arith.constant 0 : index
    %1 = vector.load %arg2[%c0_1, %c0_2] : memref<16x128xf32, #tpu.memory_space<vmem>>, vector<16x128xf32>
    %cst = arith.constant dense<0.000000e+00> : vector<8x128xf32>
    %2 = tpu.matmul %0, %1, %cst {dimension_numbers = #tpu.dot_dimension_numbers<[1], [0], [0], [1], [0, 0, 1, 1], [], []>} : vector<8x16xf32>, vector<16x128xf32>, vector<8x128xf32> -> vector<8x128xf32>
    %c0_3 = arith.constant 0 : index
    %c0_4 = arith.constant 0 : index
    %3 = vector.load %arg3[%c0_3, %c0_4] : memref<1x128xf32, #tpu.memory_space<vmem>>, vector<1x128xf32>
    %4 = vector.broadcast %3 : vector<1x128xf32> to vector<8x128xf32>
    %5 = arith.addf %2, %4 : vector<8x128xf32>
    %cst_5 = arith.constant 0.000000e+00 : f32
    %6 = vector.broadcast %cst_5 : f32 to vector<8x128xf32>
    %7 = arith.maximumf %5, %6 : vector<8x128xf32>
    %c0_6 = arith.constant 0 : index
    %c0_7 = arith.constant 0 : index
    %8 = vector.load %arg4[%c0_6, %c0_7] : memref<128x128xf32, #tpu.memory_space<vmem>>, vector<128x128xf32>
    %cst_8 = arith.constant dense<0.000000e+00> : vector<8x128xf32>
    %9 = tpu.matmul %7, %8, %cst_8 {dimension_numbers = #tpu.dot_dimension_numbers<[1], [0], [0], [1], [0, 0, 1, 1], [], []>} : vector<8x128xf32>, vector<128x128xf32>, vector<8x128xf32> -> vector<8x128xf32>
    %c0_9 = arith.constant 0 : index
    %c0_10 = arith.constant 0 : index
    %10 = vector.load %arg5[%c0_9, %c0_10] : memref<1x128xf32, #tpu.memory_space<vmem>>, vector<1x128xf32>
    %11 = vector.broadcast %10 : vector<1x128xf32> to vector<8x128xf32>
    %12 = arith.addf %9, %11 : vector<8x128xf32>
    %cst_11 = arith.constant 0.000000e+00 : f32
    %13 = vector.broadcast %cst_11 : f32 to vector<8x128xf32>
    %14 = arith.maximumf %12, %13 : vector<8x128xf32>
    %c0_12 = arith.constant 0 : index
    %c0_13 = arith.constant 0 : index
    %15 = vector.load %arg6[%c0_12, %c0_13] : memref<128x1xf32, #tpu.memory_space<vmem>>, vector<128x1xf32>
    %cst_14 = arith.constant dense<0.000000e+00> : vector<8x1xf32>
    %16 = tpu.matmul %14, %15, %cst_14 {dimension_numbers = #tpu.dot_dimension_numbers<[1], [0], [0], [1], [0, 0, 1, 1], [], []>} : vector<8x128xf32>, vector<128x1xf32>, vector<8x1xf32> -> vector<8x1xf32>
    %c0_15 = arith.constant 0 : index
    %c0_16 = arith.constant 0 : index
    %17 = vector.load %arg7[%c0_15, %c0_16] : memref<1x1xf32, #tpu.memory_space<vmem>>, vector<1x1xf32>
    %18 = vector.broadcast %17 : vector<1x1xf32> to vector<8x1xf32>
    %19 = arith.addf %16, %18 : vector<8x1xf32>
    %c0_17 = arith.constant 0 : index
    %c0_18 = arith.constant 0 : index
    %20 = vector.load %arg8[%c0_17, %c0_18] : memref<8x1xf32, #tpu.memory_space<vmem>>, vector<8x1xf32>
    tpu.vector_store %arg8[%c0_17, %c0_18], %19 {strides = array<i32>} : memref<8x1xf32, #tpu.memory_space<vmem>>, vector<8x1xf32>,
    return
  }
  func.func @transform_0(%arg0: i32) -> (i32, i32) {
    %c0_i32 = arith.constant 0 : i32
    %c0_i32_0 = arith.constant 0 : i32
    return %arg0, %c0_i32 : i32, i32
  }
  func.func @transform_1(%arg0: i32) -> (i32, i32) {
    %c0_i32 = arith.constant 0 : i32
    %c0_i32_0 = arith.constant 0 : i32
    %c0_i32_1 = arith.constant 0 : i32
    return %c0_i32, %c0_i32_0 : i32, i32
  }
  func.func @transform_2(%arg0: i32) -> (i32, i32) {
    %c0_i32 = arith.constant 0 : i32
    %c0_i32_0 = arith.constant 0 : i32
    %c0_i32_1 = arith.constant 0 : i32
    return %c0_i32, %c0_i32_0 : i32, i32
  }
  func.func @transform_3(%arg0: i32) -> (i32, i32) {
    %c0_i32 = arith.constant 0 : i32
    %c0_i32_0 = arith.constant 0 : i32
    %c0_i32_1 = arith.constant 0 : i32
    return %c0_i32, %c0_i32_0 : i32, i32
  }
  func.func @transform_4(%arg0: i32) -> (i32, i32) {
    %c0_i32 = arith.constant 0 : i32
    %c0_i32_0 = arith.constant 0 : i32
    %c0_i32_1 = arith.constant 0 : i32
    return %c0_i32, %c0_i32_0 : i32, i32
  }
  func.func @transform_5(%arg0: i32) -> (i32, i32) {
    %c0_i32 = arith.constant 0 : i32
    %c0_i32_0 = arith.constant 0 : i32
    %c0_i32_1 = arith.constant 0 : i32
    return %c0_i32, %c0_i32_0 : i32, i32
  }
  func.func @transform_6(%arg0: i32) -> (i32, i32) {
    %c0_i32 = arith.constant 0 : i32
    %c0_i32_0 = arith.constant 0 : i32
    %c0_i32_1 = arith.constant 0 : i32
    return %c0_i32, %c0_i32_0 : i32, i32
  }
  func.func @transform_7(%arg0: i32) -> (i32, i32) {
    %c0_i32 = arith.constant 0 : i32
    %c0_i32_0 = arith.constant 0 : i32
    return %arg0, %c0_i32 : i32, i32
  }
}

</mosaic_0001>

<bundles_post_ra>
// kernel: tpu_custom_call.1
= control target key start
LH: loop header
LB: loop body
LE: loop exit
PB: predicated region body
PF: predicated region fallthrough
CT: control target
= control target key end

     0   :  { %s754_s0 = inlined_call_operand.hbm [shape: f32[8,16], index: 0, kind: input, shape index: {}]   ;;  %s755_s1 = inlined_call_operand.vmem [shape: f32[16,128], index: 1, kind: input, shape index: {}]   ;;  %s756_s2 = inlined_call_operand.hbm [shape: f32[1,128], index: 2, kind: input, shape index: {}]   ;;  %s757_s3 = inlined_call_operand.vmem [shape: f32[128,128], index: 3, kind: input, shape index: {}]   ;;  %s758_s4 = inlined_call_operand.vmem [shape: f32[1,128], index: 4, kind: input, shape index: {}]   ;;  %s759_s5 = inlined_call_operand.vmem [shape: f32[128,1], index: 5, kind: input, shape index: {}]   ;;  %s760_s6 = inlined_call_operand.<no memory space> [shape: f32[1,1], index: 6, kind: input, shape index: {}]   ;;  %s761_s7 = inlined_call_operand.vmem [shape: f32[8,1], index: 7, kind: output, shape index: {}]  }
   0x1   :  { %v12_v0 = vstv %s760_s6 }
   0x2   :  { %13 = vst [vmem:[#allocation2] sm:$0x1] %v12_v0 }
   0x3   :  { %14 = vsyncpa [#allocation4], 0 }
   0x4   :  { %15 = vsyncpa [#allocation6], 0  ;;  %s554_s26 = smov [#allocation3]   ;;  %s555_s28 = smov [#allocation5]  }
   0x5   :  { %s22_s27 = sshll.u32 %s554_s26, 4  ;;  %s34_s29 = sshll.u32 %s555_s28, 4  ;;  %s23_s27 = int_to_ptr.vmem [resolvable:$true] %s22_s27  ;;  %s35_s29 = int_to_ptr.vmem [resolvable:$true] %s34_s29 }
   0x6   :  { %s506_s9 = scalar_lea.hbm %s754_s0, 128 }
   0x7   :  { %p507_p0 = scmp.ne.s32.totalorder %s754_s0, %s506_s9  ;;  %p510_p1 = scmp.lt.u32.totalorder %s506_s9, %s754_s0 }
   0x9   :  { %p512_p2 = pnand %p510_p1, %p507_p0 }
   0xb   :  { %515 = shalt.err (!%p512_p2)
}
   0xc   :  { %s516_s6 = scalar_lea.vmem %s23_s27, 128  ;;  %p521_p4 = scmp.lt.s32.totalorder %s23_s27, %s23_s27 }
   0xd   :  { %p517_p3 = scmp.ne.s32.totalorder %s23_s27, %s516_s6  ;;  %p522_p5 = scmp.lt.s32.totalorder %s516_s6, %s516_s6 }
   0xf   :  { %p523_p6 = por %p522_p5, %p521_p4 }
  0x11   :  { %p524_p7 = pnand %p523_p6, %p517_p3 }
  0x13   :  { %527 = shalt.err (!%p524_p7)
}
  0x14   :  { %25 = dma.hbm_to_vmem [thread:$0]  %s754_s0, 128, %s23_s27, [#allocation4]  }
  0x15   :  { %s528_s18 = scalar_lea.hbm %s756_s2, 16 }
  0x16   :  { %p529_p8 = scmp.ne.s32.totalorder %s756_s2, %s528_s18  ;;  %p532_p9 = scmp.lt.u32.totalorder %s528_s18, %s756_s2 }
  0x18   :  { %p534_p10 = pnand %p532_p9, %p529_p8 }
  0x1a   :  { %537 = shalt.err (!%p534_p10)
}
  0x1b   :  { %s538_s23 = scalar_lea.vmem %s35_s29, 16  ;;  %s542_s24 = scalar_lea.vmem %s35_s29, 32 }
  0x1c   :  { %p539_p11 = scmp.ne.s32.totalorder %s35_s29, %s538_s23  ;;  %p543_p12 = scmp.lt.s32.totalorder %s35_s29, %s35_s29 }
  0x1d   :  { %p544_p13 = scmp.lt.s32.totalorder %s542_s24, %s538_s23 }
  0x1f   :  { %p545_p0 = por %p544_p13, %p543_p12 }
  0x21   :  { %p546_p1 = pnand %p545_p0, %p539_p11 }
  0x23   :  { %549 = shalt.err (!%p546_p1)
}
  0x24   :  { %37 = dma.hbm_to_vmem [thread:$0]  %s756_s2, 16, %s35_s29, [#allocation6]  }
  0x25   :  { %550 = dma.done.wait [#allocation4], 128  }
  0x26   :  { %551 = vsyncadd [#allocation4], 4294967168 }
  0x27   :  { %552 = dma.done.wait [#allocation6], 16  }
  0x28   :  { %553 = vsyncadd [#allocation6], 4294967280  ;;  %v556_v1 = vmov 0.0|0.0   ;;  %vm557_vm0 = vmmov 0   ;;  %v558_v2 = vmov 0.0   ;;  %v53_v3 = vld [vmem:[%s755_s1] sm:$0xff] }
  0x29   :  { %450 = vmatprep.subr.bf16.mxu0 %v556_v1  ;;  %377 = vmatprep.mubr.msk.f32.mxu0 %vm557_vm0, %v558_v2  ;;  %v54_v4 = vld [vmem:[%s755_s1 + $0x8] sm:$0xff]  ;;  %v137_v6 = vld [vmem:[%s757_s3] sm:$0xff]  ;;  %v139_v8 = vld [vmem:[%s757_s3 + $0x10] sm:$0xff]  ;;  %vm62_vm1 = vcmask 130048   ;;  %vm324_vm2 = vcmask 7168  }
  0x2a   :  { %453 = vmatprep.subr.bf16.mxu1 %v556_v1  ;;  %412 = vmatprep.mubr.msk.f32.mxu1 %vm557_vm0, %v558_v2  ;;  %v451_v5 = vpack.c.bf16 %v54_v4, %v53_v3  ;;  %v138_v7 = vld [vmem:[%s757_s3 + $0x8] sm:$0xff]  ;;  %v140_v10 = vld [vmem:[%s757_s3 + $0x18] sm:$0xff]  ;;  %v141_v13 = vld [vmem:[%s757_s3 + $0x20] sm:$0xff] }
  0x2b   :  { %v454_v9 = vpack.c.bf16 %v138_v7, %v137_v6  ;;  %v52_v11 = vld [vmem:[#allocation3] sm:$0xff]  ;;  %v457_v12 = vpack.c.bf16 %v140_v10, %v139_v8  ;;  %v143_v16 = vld [vmem:[%s757_s3 + $0x30] sm:$0xff]  ;;  %v144_v17 = vld [vmem:[%s757_s3 + $0x38] sm:$0xff] }
  0x2c   :  { %452 = vmatpush3.bf16.msra.mxu0 %v451_v5  ;;  %v142_v14 = vld [vmem:[%s757_s3 + $0x28] sm:$0xff]  ;;  %v463_v18 = vpack.c.bf16 %v144_v17, %v143_v16  ;;  %v145_v19 = vld [vmem:[%s757_s3 + $0x40] sm:$0xff]  ;;  %v147_v22 = vld [vmem:[%s757_s3 + $0x50] sm:$0xff] }
  0x2d   :  { %455 = vmatpush3.bf16.msra.mxu1 %v454_v9  ;;  %477 = vmatprep.subr.bf16.mxu0 %v556_v1  ;;  %v460_v15 = vpack.c.bf16 %v142_v14, %v141_v13  ;;  %v146_v20 = vld [vmem:[%s757_s3 + $0x48] sm:$0xff]  ;;  %v148_v23 = vld [vmem:[%s757_s3 + $0x58] sm:$0xff]  ;;  %v149_v25 = vld [vmem:[%s757_s3 + $0x60] sm:$0xff] }
  0x2e   :  { %456 = vmatprep.subr.bf16.mxu1 %v556_v1  ;;  %v466_v21 = vpack.c.bf16 %v146_v20, %v145_v19  ;;  %v469_v24 = vpack.c.bf16 %v148_v23, %v147_v22  ;;  %v150_v26 = vld [vmem:[%s757_s3 + $0x68] sm:$0xff]  ;;  %v151_v28 = vld [vmem:[%s757_s3 + $0x70] sm:$0xff]  ;;  %v152_v29 = vld [vmem:[%s757_s3 + $0x78] sm:$0xff] }
  0x2f   :  { %378 = vmatmul.mubr.msk.f32.vlgmr.msra.gmra.mrb[0].mxu0 %vm62_vm1, %v52_v11  ;;  %v472_v27 = vpack.c.bf16 %v150_v26, %v149_v25  ;;  %v475_v30 = vpack.c.bf16 %v152_v29, %v151_v28  ;;  %v231_v31 = vld [vmem:[%s759_s5] sm:$0xff]  ;;  %v232_v32 = vld [vmem:[%s759_s5 + $0x8] sm:$0xff]  ;;  %v233_v33 = vld [vmem:[%s759_s5 + $0x10] sm:$0xff] }
  0x30   :  { %447 = vmatprep.mubr.msk.f32.mxu0 %vm557_vm0, %v558_v2  ;;  %v478_v34 = vpack.c.bf16 %v232_v32, %v231_v31  ;;  %v234_v35 = vld [vmem:[%s759_s5 + $0x18] sm:$0xff]  ;;  %v235_v37 = vld [vmem:[%s759_s5 + $0x20] sm:$0xff]  ;;  %v236_v38 = vld [vmem:[%s759_s5 + $0x28] sm:$0xff] }
  0x31   :  { %458 = vmatpush3.bf16.msra.mxu1 %v457_v12  ;;  %v481_v36 = vpack.c.bf16 %v234_v35, %v233_v33  ;;  %v484_v39 = vpack.c.bf16 %v236_v38, %v235_v37  ;;  %v237_v40 = vld [vmem:[%s759_s5 + $0x30] sm:$0xff]  ;;  %v238_v41 = vld [vmem:[%s759_s5 + $0x38] sm:$0xff]  ;;  %v239_v43 = vld [vmem:[%s759_s5 + $0x40] sm:$0xff] }
  0x32   :  { %459 = vmatprep.subr.bf16.mxu1 %v556_v1  ;;  %479 = vmatpush3.bf16.msra.mxu0 %v478_v34  ;;  %v487_v42 = vpack.c.bf16 %v238_v41, %v237_v40  ;;  %v240_v44 = vld [vmem:[%s759_s5 + $0x48] sm:$0xff]  ;;  %v241_v46 = vld [vmem:[%s759_s5 + $0x50] sm:$0xff]  ;;  %v242_v47 = vld [vmem:[%s759_s5 + $0x58] sm:$0xff] }
  0x33   :  { %480 = vmatprep.subr.bf16.mxu0 %v556_v1  ;;  %v490_v45 = vpack.c.bf16 %v240_v44, %v239_v43  ;;  %v493_v48 = vpack.c.bf16 %v242_v47, %v241_v46  ;;  %v243_v49 = vld [vmem:[%s759_s5 + $0x60] sm:$0xff]  ;;  %v244_v50 = vld [vmem:[%s759_s5 + $0x68] sm:$0xff]  ;;  %v245_v57 = vld [vmem:[%s759_s5 + $0x70] sm:$0xff] }
  0x34   :  { %v496_v51 = vpack.c.bf16 %v244_v50, %v243_v49  ;;  %v332_v52 = vld [vmem:[#allocation5] ss:$0 sm:$0xff]  ;;  %v246_v58 = vld [vmem:[%s759_s5 + $0x78] sm:$0xff]  ;;  %v334_v60 = vld [vmem:[%s758_s4] ss:$0 sm:$0xff] }
  0x35   :  { %461 = vmatpush3.bf16.msra.mxu1 %v460_v15  ;;  %v499_v59 = vpack.c.bf16 %v246_v58, %v245_v57 }
  0x36   :  { %462 = vmatprep.subr.bf16.mxu1 %v556_v1  ;;  %482 = vmatpush3.bf16.msra.mxu0 %v481_v36 }
  0x37   :  { %483 = vmatprep.subr.bf16.mxu0 %v556_v1 }
  0x39   :  { %464 = vmatpush3.bf16.msra.mxu1 %v463_v18 }
  0x3a   :  { %465 = vmatprep.subr.bf16.mxu1 %v556_v1  ;;  %485 = vmatpush3.bf16.msra.mxu0 %v484_v39 }
  0x3b   :  { %486 = vmatprep.subr.bf16.mxu0 %v556_v1 }
  0x3d   :  { %467 = vmatpush3.bf16.msra.mxu1 %v466_v21 }
  0x3e   :  { %468 = vmatprep.subr.bf16.mxu1 %v556_v1  ;;  %488 = vmatpush3.bf16.msra.mxu0 %v487_v42 }
  0x3f   :  { %489 = vmatprep.subr.bf16.mxu0 %v556_v1 }
  0x41   :  { %470 = vmatpush3.bf16.msra.mxu1 %v469_v24 }
  0x42   :  { %471 = vmatprep.subr.bf16.mxu1 %v556_v1  ;;  %491 = vmatpush3.bf16.msra.mxu0 %v490_v45 }
  0x43   :  { %492 = vmatprep.subr.bf16.mxu0 %v556_v1 }
  0x45   :  { %473 = vmatpush3.bf16.msra.mxu1 %v472_v27 }
  0x46   :  { %474 = vmatprep.subr.bf16.mxu1 %v556_v1  ;;  %494 = vmatpush3.bf16.msra.mxu0 %v493_v48 }
  0x47   :  { %495 = vmatprep.subr.bf16.mxu0 %v556_v1 }
  0x49   :  { %476 = vmatpush3.bf16.msra.mxu1 %v475_v30 }
  0x4a   :  { %497 = vmatpush3.bf16.msra.mxu0 %v496_v51 }
  0x4b   :  { %498 = vmatprep.subr.bf16.mxu0 %v556_v1  ;;  %v335_v1 = vld [vmem:[#allocation2] ss:$0 sm:$0xff] }
  0x4e   :  { %500 = vmatpush3.bf16.msra.mxu0 %v499_v59 }
 0x102   :  { %v132_v53 = vpop.f32.mrb[0].mxu0 }
 0x103   :  { %v133_v54 = vadd.f32 %v332_v52, %v132_v53  ;;  %v379_v55 = vpop.f32.mrb[1].mxu0 }
 0x105   :  { %v136_v56 = vmax.f32 %v133_v54, 0.0 }
 0x107   :  { %413 = vmatmul.mubr.f32.vlgmr.msra.gmra.mrb[0].mxu1 %v136_v56 }
 0x1da   :  { %v226_v61 = vpop.f32.mrb[0].mxu1 }
 0x1db   :  { %v227_v62 = vadd.f32 %v334_v60, %v226_v61  ;;  %v414_v63 = vpop.f32.mrb[1].mxu1 }
 0x1dd   :  { %v230_v0 = vmax.f32 %v227_v62, 0.0 }
 0x1df   :  { %448 = vmatmul.mubr.f32.vlgmr.msra.gmra.mrb[2].mxu0 %v230_v0 }
 0x2b2   :  { %v320_v2 = vpop.f32.mrb[2].mxu0 }
 0x2b3   :  { %v321_v3 = vadd.f32 %v335_v1, %v320_v2  ;;  %v449_v4 = vpop.f32.mrb[3].mxu0 }
 0x2b5   :  { %325 = vst.msk [vmem:[%s761_s7] sm:$0xff] %vm324_vm2, %v321_v3 }
 0x2b6   :  { %330 = vsyncpa [#allocation4], 1 }
 0x2b7   :  { %331 = vsyncpa [#allocation6], 1 }

</bundles_post_ra>
